<compile_context>
chip_gen: v6e
topology: v6e:2x2x1
jax: 0.10.0
libtpu: 0.0.40
codegen_flags: <defaults>
</compile_context>

<pallas_src>
import functools

import numpy as np
import jax
import jax.numpy as jnp
from jax.experimental import pallas as pl
from jax.experimental.pallas import tpu as pltpu


def make_shuffle_permutation(input_dim: int, groups: int, shuffle_first_last: bool = True):
    """Replicates ShuffleFlow.__init__ permutation construction (numpy)."""
    assert input_dim % 2 == 0
    assert input_dim > 2
    assert input_dim % groups == 0
    splits = input_dim // groups
    permute = np.arange(input_dim).reshape(groups, splits).T.flatten().copy()
    if shuffle_first_last:
        t1, t2 = int(permute[0]), int(permute[-1])
        permute[0], permute[-1] = t2, t1
    inverse_permute = np.argsort(permute)
    return permute, inverse_permute


def _shuffle_gather_kernel(z_ref, out_ref, *, a: int, b: int, d: int, swap: bool):
    """out[:, j] = z[:, (j % a) * b + (j // a)]  (+ optional first/last swap).

    With (a, b) = (groups, splits) this is exactly the ShuffleNet channel
    shuffle (arange.reshape(groups, splits).T.flatten()); with (a, b) swapped it
    is the inverse permutation.  Pure VPU/XLU data movement.
    """
    z = z_ref[...]
    rows = z.shape[0]
    j = jax.lax.broadcasted_iota(jnp.int32, (rows, d), 1)
    src = (j % a) * b + (j // a)
    if swap:
        # Before the swap permute[0] == 0 and permute[d-1] == d-1, so the
        # first/last interchange just redirects those two output lanes.
        src = jnp.where(j == 0, d - 1, src)
        src = jnp.where(j == d - 1, 0, src)
    out_ref[...] = jnp.take_along_axis(z, src, axis=-1)


def _shuffle_slice_kernel(z_ref, out_ref, *, perm):
    """Fallback: static per-column lane copies (always lowers; matmul-free)."""
    z = z_ref[...]
    for j, p in enumerate(perm):
        out_ref[:, j:j + 1] = z[:, p:p + 1]


def _pick_block_rows(batch: int, feat: int, itemsize: int,
                     target_block_bytes: int = 4 << 20, max_rows: int = 2048) -> int:
    """Largest multiple-of-8 divisor of `batch` giving a <= ~4 MiB block."""
    if batch <= 8 or batch % 8 != 0:
        return batch
    tb = min(batch, max_rows, max(8, target_block_bytes // max(1, feat * itemsize)))
    tb = max(8, (tb // 8) * 8)
    while tb > 8 and batch % tb != 0:
        tb -= 8
    return tb if batch % tb == 0 else batch


def _permute_pallas(z: jax.Array, *, a: int, b: int, swap: bool, perm, block_rows=None):
    B, D = z.shape
    tb = block_rows
    if tb is None or tb <= 0 or B % tb != 0 or (tb % 8 != 0 and tb != B):
        tb = _pick_block_rows(B, D, z.dtype.itemsize)
    grid = (B // tb,)

    in_specs = [pl.BlockSpec((tb, D), lambda i: (i, 0))]
    out_specs = pl.BlockSpec((tb, D), lambda i: (i, 0))
    out_shape = jax.ShapeDtypeStruct((B, D), z.dtype)
    compiler_params = pltpu.CompilerParams(
        dimension_semantics=("parallel",),          # shard batch tiles across TCs (v7x)
        vmem_limit_bytes=32 * 1024 * 1024,          # safe on v5e/v6e/v7x with <=4MiB blocks
    )

    def call(kernel):
        return pl.pallas_call(
            kernel,
            out_shape=out_shape,
            grid=grid,
            in_specs=in_specs,
            out_specs=out_specs,
            compiler_params=compiler_params,
        )(z)

    try:
        return call(functools.partial(_shuffle_gather_kernel, a=a, b=b, d=D, swap=swap))
    except Exception:
        # In-kernel lane gather unsupported on this backend/version: fall back
        # to static per-column copies (still matmul-free and batch-tiled).
        return call(functools.partial(
            _shuffle_slice_kernel, perm=tuple(int(p) for p in perm)))


class ShuffleFlowPallas:
    """JAX/Pallas equivalent of the PyTorch ShuffleFlow module (no params)."""

    def __init__(self, input_dim: int, groups: int, shuffle_first_last: bool = True):
        self.input_dim = int(input_dim)
        self.groups = int(groups)
        self.splits = self.input_dim // self.groups
        self.shuffle_first_last = bool(shuffle_first_last)
        self.permute, self.inverse_permute = make_shuffle_permutation(
            input_dim, groups, shuffle_first_last)

    def forward(self, z: jax.Array, block_rows=None):
        out = _permute_pallas(z, a=self.groups, b=self.splits,
                              swap=self.shuffle_first_last,
                              perm=self.permute, block_rows=block_rows)
        logdet = jnp.zeros((z.shape[0], 1), z.dtype)   # |det| of a permutation is 1
        return out, logdet

    def inverse(self, z: jax.Array, block_rows=None):
        out = _permute_pallas(z, a=self.splits, b=self.groups,
                              swap=self.shuffle_first_last,
                              perm=self.inverse_permute, block_rows=block_rows)
        logdet = jnp.zeros((z.shape[0], 1), z.dtype)
        return out, logdet


if __name__ == "__main__":
    # Small deterministic test shapes (input_dim must be even, > 2, divisible by groups).
    B, D, groups = 16, 32, 4
    key = jax.random.PRNGKey(0)
    z = jax.random.normal(key, (B, D), dtype=jnp.float32)

    flow = ShuffleFlowPallas(input_dim=D, groups=groups, shuffle_first_last=True)

    out_fwd, logdet_fwd = flow.forward(z, block_rows=8)    # grid=(2,), pipelined
    out_inv, logdet_inv = flow.inverse(z, block_rows=8)
    jax.block_until_ready((out_fwd, logdet_fwd, out_inv, logdet_inv))

    # Reference check against the torch-style permutation (pure-JAX gather).
    ref_fwd = z[:, jnp.asarray(flow.permute)]
    ref_inv = z[:, jnp.asarray(flow.inverse_permute)]
    assert out_fwd.shape == (B, D) and logdet_fwd.shape == (B, 1)
    np.testing.assert_array_equal(np.asarray(out_fwd), np.asarray(ref_fwd))
    np.testing.assert_array_equal(np.asarray(out_inv), np.asarray(ref_inv))
    np.testing.assert_array_equal(np.asarray(logdet_fwd), np.zeros((B, 1), np.float32))
    np.testing.assert_array_equal(np.asarray(logdet_inv), np.zeros((B, 1), np.float32))

    # forward(inverse(z)) round-trip with auto-picked batch tiling (grid=(1,)).
    rt, _ = flow.forward(out_inv)
    jax.block_until_ready(rt)
    np.testing.assert_array_equal(np.asarray(rt), np.asarray(z))

    print("KERNEL_OK")
</pallas_src>

<mosaic_0001>
module attributes {stable_mosaic.version = 11 : i64} {
  func.func @_shuffle_slice_kernel(%arg0: i32, %arg1: memref<8x32xf32, #tpu.memory_space<vmem>>, %arg2: memref<8x32xf32, #tpu.memory_space<vmem>>) attributes {dimension_semantics = [#tpu.dimension_semantics<parallel>], iteration_bounds = array<i64: 2>, scalar_prefetch = 0 : i64, scratch_operands = 0 : i64, tpu.core_type = #tpu.core_type<tc>, window_params = [{transform_indices = @transform_0, window_bounds = array<i64: 8, 32>}, {transform_indices = @transform_1, window_bounds = array<i64: 8, 32>}]} {
    %c0 = arith.constant 0 : index
    %c0_0 = arith.constant 0 : index
    %0 = vector.load %arg1[%c0, %c0_0] : memref<8x32xf32, #tpu.memory_space<vmem>>, vector<8x32xf32>
    %1 = vector.extract_strided_slice %0 {offsets = [0, 31], sizes = [8, 1], strides = [1, 1]} : vector<8x32xf32> to vector<8x1xf32>
    %c0_1 = arith.constant 0 : index
    %c0_2 = arith.constant 0 : index
    %2 = vector.load %arg2[%c0_1, %c0_2] : memref<8x32xf32, #tpu.memory_space<vmem>>, vector<8x1xf32>
    tpu.vector_store %arg2[%c0_1, %c0_2], %1 {strides = array<i32>} : memref<8x32xf32, #tpu.memory_space<vmem>>, vector<8x1xf32>,
    %3 = vector.extract_strided_slice %0 {offsets = [0, 8], sizes = [8, 1], strides = [1, 1]} : vector<8x32xf32> to vector<8x1xf32>
    %c0_3 = arith.constant 0 : index
    %c1 = arith.constant 1 : index
    %4 = vector.load %arg2[%c0_3, %c1] : memref<8x32xf32, #tpu.memory_space<vmem>>, vector<8x1xf32>
    tpu.vector_store %arg2[%c0_3, %c1], %3 {strides = array<i32>} : memref<8x32xf32, #tpu.memory_space<vmem>>, vector<8x1xf32>,
    %5 = vector.extract_strided_slice %0 {offsets = [0, 16], sizes = [8, 1], strides = [1, 1]} : vector<8x32xf32> to vector<8x1xf32>
    %c0_4 = arith.constant 0 : index
    %c2 = arith.constant 2 : index
    %6 = vector.load %arg2[%c0_4, %c2] : memref<8x32xf32, #tpu.memory_space<vmem>>, vector<8x1xf32>
    tpu.vector_store %arg2[%c0_4, %c2], %5 {strides = array<i32>} : memref<8x32xf32, #tpu.memory_space<vmem>>, vector<8x1xf32>,
    %7 = vector.extract_strided_slice %0 {offsets = [0, 24], sizes = [8, 1], strides = [1, 1]} : vector<8x32xf32> to vector<8x1xf32>
    %c0_5 = arith.constant 0 : index
    %c3 = arith.constant 3 : index
    %8 = vector.load %arg2[%c0_5, %c3] : memref<8x32xf32, #tpu.memory_space<vmem>>, vector<8x1xf32>
    tpu.vector_store %arg2[%c0_5, %c3], %7 {strides = array<i32>} : memref<8x32xf32, #tpu.memory_space<vmem>>, vector<8x1xf32>,
    %9 = vector.extract_strided_slice %0 {offsets = [0, 1], sizes = [8, 1], strides = [1, 1]} : vector<8x32xf32> to vector<8x1xf32>
    %c0_6 = arith.constant 0 : index
    %c4 = arith.constant 4 : index
    %10 = vector.load %arg2[%c0_6, %c4] : memref<8x32xf32, #tpu.memory_space<vmem>>, vector<8x1xf32>
    tpu.vector_store %arg2[%c0_6, %c4], %9 {strides = array<i32>} : memref<8x32xf32, #tpu.memory_space<vmem>>, vector<8x1xf32>,
    %11 = vector.extract_strided_slice %0 {offsets = [0, 9], sizes = [8, 1], strides = [1, 1]} : vector<8x32xf32> to vector<8x1xf32>
    %c0_7 = arith.constant 0 : index
    %c5 = arith.constant 5 : index
    %12 = vector.load %arg2[%c0_7, %c5] : memref<8x32xf32, #tpu.memory_space<vmem>>, vector<8x1xf32>
    tpu.vector_store %arg2[%c0_7, %c5], %11 {strides = array<i32>} : memref<8x32xf32, #tpu.memory_space<vmem>>, vector<8x1xf32>,
    %13 = vector.extract_strided_slice %0 {offsets = [0, 17], sizes = [8, 1], strides = [1, 1]} : vector<8x32xf32> to vector<8x1xf32>
    %c0_8 = arith.constant 0 : index
    %c6 = arith.constant 6 : index
    %14 = vector.load %arg2[%c0_8, %c6] : memref<8x32xf32, #tpu.memory_space<vmem>>, vector<8x1xf32>
    tpu.vector_store %arg2[%c0_8, %c6], %13 {strides = array<i32>} : memref<8x32xf32, #tpu.memory_space<vmem>>, vector<8x1xf32>,
    %15 = vector.extract_strided_slice %0 {offsets = [0, 25], sizes = [8, 1], strides = [1, 1]} : vector<8x32xf32> to vector<8x1xf32>
    %c0_9 = arith.constant 0 : index
    %c7 = arith.constant 7 : index
    %16 = vector.load %arg2[%c0_9, %c7] : memref<8x32xf32, #tpu.memory_space<vmem>>, vector<8x1xf32>
    tpu.vector_store %arg2[%c0_9, %c7], %15 {strides = array<i32>} : memref<8x32xf32, #tpu.memory_space<vmem>>, vector<8x1xf32>,
    %17 = vector.extract_strided_slice %0 {offsets = [0, 2], sizes = [8, 1], strides = [1, 1]} : vector<8x32xf32> to vector<8x1xf32>
    %c0_10 = arith.constant 0 : index
    %c8 = arith.constant 8 : index
    %18 = vector.load %arg2[%c0_10, %c8] : memref<8x32xf32, #tpu.memory_space<vmem>>, vector<8x1xf32>
    tpu.vector_store %arg2[%c0_10, %c8], %17 {strides = array<i32>} : memref<8x32xf32, #tpu.memory_space<vmem>>, vector<8x1xf32>,
    %19 = vector.extract_strided_slice %0 {offsets = [0, 10], sizes = [8, 1], strides = [1, 1]} : vector<8x32xf32> to vector<8x1xf32>
    %c0_11 = arith.constant 0 : index
    %c9 = arith.constant 9 : index
    %20 = vector.load %arg2[%c0_11, %c9] : memref<8x32xf32, #tpu.memory_space<vmem>>, vector<8x1xf32>
    tpu.vector_store %arg2[%c0_11, %c9], %19 {strides = array<i32>} : memref<8x32xf32, #tpu.memory_space<vmem>>, vector<8x1xf32>,
    %21 = vector.extract_strided_slice %0 {offsets = [0, 18], sizes = [8, 1], strides = [1, 1]} : vector<8x32xf32> to vector<8x1xf32>
    %c0_12 = arith.constant 0 : index
    %c10 = arith.constant 10 : index
    %22 = vector.load %arg2[%c0_12, %c10] : memref<8x32xf32, #tpu.memory_space<vmem>>, vector<8x1xf32>
    tpu.vector_store %arg2[%c0_12, %c10], %21 {strides = array<i32>} : memref<8x32xf32, #tpu.memory_space<vmem>>, vector<8x1xf32>,
    %23 = vector.extract_strided_slice %0 {offsets = [0, 26], sizes = [8, 1], strides = [1, 1]} : vector<8x32xf32> to vector<8x1xf32>
    %c0_13 = arith.constant 0 : index
    %c11 = arith.constant 11 : index
    %24 = vector.load %arg2[%c0_13, %c11] : memref<8x32xf32, #tpu.memory_space<vmem>>, vector<8x1xf32>
    tpu.vector_store %arg2[%c0_13, %c11], %23 {strides = array<i32>} : memref<8x32xf32, #tpu.memory_space<vmem>>, vector<8x1xf32>,
    %25 = vector.extract_strided_slice %0 {offsets = [0, 3], sizes = [8, 1], strides = [1, 1]} : vector<8x32xf32> to vector<8x1xf32>
    %c0_14 = arith.constant 0 : index
    %c12 = arith.constant 12 : index
    %26 = vector.load %arg2[%c0_14, %c12] : memref<8x32xf32, #tpu.memory_space<vmem>>, vector<8x1xf32>
    tpu.vector_store %arg2[%c0_14, %c12], %25 {strides = array<i32>} : memref<8x32xf32, #tpu.memory_space<vmem>>, vector<8x1xf32>,
    %27 = vector.extract_strided_slice %0 {offsets = [0, 11], sizes = [8, 1], strides = [1, 1]} : vector<8x32xf32> to vector<8x1xf32>
    %c0_15 = arith.constant 0 : index
    %c13 = arith.constant 13 : index
    %28 = vector.load %arg2[%c0_15, %c13] : memref<8x32xf32, #tpu.memory_space<vmem>>, vector<8x1xf32>
    tpu.vector_store %arg2[%c0_15, %c13], %27 {strides = array<i32>} : memref<8x32xf32, #tpu.memory_space<vmem>>, vector<8x1xf32>,
    %29 = vector.extract_strided_slice %0 {offsets = [0, 19], sizes = [8, 1], strides = [1, 1]} : vector<8x32xf32> to vector<8x1xf32>
    %c0_16 = arith.constant 0 : index
    %c14 = arith.constant 14 : index
    %30 = vector.load %arg2[%c0_16, %c14] : memref<8x32xf32, #tpu.memory_space<vmem>>, vector<8x1xf32>
    tpu.vector_store %arg2[%c0_16, %c14], %29 {strides = array<i32>} : memref<8x32xf32, #tpu.memory_space<vmem>>, vector<8x1xf32>,
    %31 = vector.extract_strided_slice %0 {offsets = [0, 27], sizes = [8, 1], strides = [1, 1]} : vector<8x32xf32> to vector<8x1xf32>
    %c0_17 = arith.constant 0 : index
    %c15 = arith.constant 15 : index
    %32 = vector.load %arg2[%c0_17, %c15] : memref<8x32xf32, #tpu.memory_space<vmem>>, vector<8x1xf32>
    tpu.vector_store %arg2[%c0_17, %c15], %31 {strides = array<i32>} : memref<8x32xf32, #tpu.memory_space<vmem>>, vector<8x1xf32>,
    %33 = vector.extract_strided_slice %0 {offsets = [0, 4], sizes = [8, 1], strides = [1, 1]} : vector<8x32xf32> to vector<8x1xf32>
    %c0_18 = arith.constant 0 : index
    %c16 = arith.constant 16 : index
    %34 = vector.load %arg2[%c0_18, %c16] : memref<8x32xf32, #tpu.memory_space<vmem>>, vector<8x1xf32>
    tpu.vector_store %arg2[%c0_18, %c16], %33 {strides = array<i32>} : memref<8x32xf32, #tpu.memory_space<vmem>>, vector<8x1xf32>,
    %35 = vector.extract_strided_slice %0 {offsets = [0, 12], sizes = [8, 1], strides = [1, 1]} : vector<8x32xf32> to vector<8x1xf32>
    %c0_19 = arith.constant 0 : index
    %c17 = arith.constant 17 : index
    %36 = vector.load %arg2[%c0_19, %c17] : memref<8x32xf32, #tpu.memory_space<vmem>>, vector<8x1xf32>
    tpu.vector_store %arg2[%c0_19, %c17], %35 {strides = array<i32>} : memref<8x32xf32, #tpu.memory_space<vmem>>, vector<8x1xf32>,
    %37 = vector.extract_strided_slice %0 {offsets = [0, 20], sizes = [8, 1], strides = [1, 1]} : vector<8x32xf32> to vector<8x1xf32>
    %c0_20 = arith.constant 0 : index
    %c18 = arith.constant 18 : index
    %38 = vector.load %arg2[%c0_20, %c18] : memref<8x32xf32, #tpu.memory_space<vmem>>, vector<8x1xf32>
    tpu.vector_store %arg2[%c0_20, %c18], %37 {strides = array<i32>} : memref<8x32xf32, #tpu.memory_space<vmem>>, vector<8x1xf32>,
    %39 = vector.extract_strided_slice %0 {offsets = [0, 28], sizes = [8, 1], strides = [1, 1]} : vector<8x32xf32> to vector<8x1xf32>
    %c0_21 = arith.constant 0 : index
    %c19 = arith.constant 19 : index
    %40 = vector.load %arg2[%c0_21, %c19] : memref<8x32xf32, #tpu.memory_space<vmem>>, vector<8x1xf32>
    tpu.vector_store %arg2[%c0_21, %c19], %39 {strides = array<i32>} : memref<8x32xf32, #tpu.memory_space<vmem>>, vector<8x1xf32>,
    %41 = vector.extract_strided_slice %0 {offsets = [0, 5], sizes = [8, 1], strides = [1, 1]} : vector<8x32xf32> to vector<8x1xf32>
    %c0_22 = arith.constant 0 : index
    %c20 = arith.constant 20 : index
    %42 = vector.load %arg2[%c0_22, %c20] : memref<8x32xf32, #tpu.memory_space<vmem>>, vector<8x1xf32>
    tpu.vector_store %arg2[%c0_22, %c20], %41 {strides = array<i32>} : memref<8x32xf32, #tpu.memory_space<vmem>>, vector<8x1xf32>,
    %43 = vector.extract_strided_slice %0 {offsets = [0, 13], sizes = [8, 1], strides = [1, 1]} : vector<8x32xf32> to vector<8x1xf32>
    %c0_23 = arith.constant 0 : index
    %c21 = arith.constant 21 : index
    %44 = vector.load %arg2[%c0_23, %c21] : memref<8x32xf32, #tpu.memory_space<vmem>>, vector<8x1xf32>
    tpu.vector_store %arg2[%c0_23, %c21], %43 {strides = array<i32>} : memref<8x32xf32, #tpu.memory_space<vmem>>, vector<8x1xf32>,
    %45 = vector.extract_strided_slice %0 {offsets = [0, 21], sizes = [8, 1], strides = [1, 1]} : vector<8x32xf32> to vector<8x1xf32>
    %c0_24 = arith.constant 0 : index
    %c22 = arith.constant 22 : index
    %46 = vector.load %arg2[%c0_24, %c22] : memref<8x32xf32, #tpu.memory_space<vmem>>, vector<8x1xf32>
    tpu.vector_store %arg2[%c0_24, %c22], %45 {strides = array<i32>} : memref<8x32xf32, #tpu.memory_space<vmem>>, vector<8x1xf32>,
    %47 = vector.extract_strided_slice %0 {offsets = [0, 29], sizes = [8, 1], strides = [1, 1]} : vector<8x32xf32> to vector<8x1xf32>
    %c0_25 = arith.constant 0 : index
    %c23 = arith.constant 23 : index
    %48 = vector.load %arg2[%c0_25, %c23] : memref<8x32xf32, #tpu.memory_space<vmem>>, vector<8x1xf32>
    tpu.vector_store %arg2[%c0_25, %c23], %47 {strides = array<i32>} : memref<8x32xf32, #tpu.memory_space<vmem>>, vector<8x1xf32>,
    %49 = vector.extract_strided_slice %0 {offsets = [0, 6], sizes = [8, 1], strides = [1, 1]} : vector<8x32xf32> to vector<8x1xf32>
    %c0_26 = arith.constant 0 : index
    %c24 = arith.constant 24 : index
    %50 = vector.load %arg2[%c0_26, %c24] : memref<8x32xf32, #tpu.memory_space<vmem>>, vector<8x1xf32>
    tpu.vector_store %arg2[%c0_26, %c24], %49 {strides = array<i32>} : memref<8x32xf32, #tpu.memory_space<vmem>>, vector<8x1xf32>,
    %51 = vector.extract_strided_slice %0 {offsets = [0, 14], sizes = [8, 1], strides = [1, 1]} : vector<8x32xf32> to vector<8x1xf32>
    %c0_27 = arith.constant 0 : index
    %c25 = arith.constant 25 : index
    %52 = vector.load %arg2[%c0_27, %c25] : memref<8x32xf32, #tpu.memory_space<vmem>>, vector<8x1xf32>
    tpu.vector_store %arg2[%c0_27, %c25], %51 {strides = array<i32>} : memref<8x32xf32, #tpu.memory_space<vmem>>, vector<8x1xf32>,
    %53 = vector.extract_strided_slice %0 {offsets = [0, 22], sizes = [8, 1], strides = [1, 1]} : vector<8x32xf32> to vector<8x1xf32>
    %c0_28 = arith.constant 0 : index
    %c26 = arith.constant 26 : index
    %54 = vector.load %arg2[%c0_28, %c26] : memref<8x32xf32, #tpu.memory_space<vmem>>, vector<8x1xf32>
    tpu.vector_store %arg2[%c0_28, %c26], %53 {strides = array<i32>} : memref<8x32xf32, #tpu.memory_space<vmem>>, vector<8x1xf32>,
    %55 = vector.extract_strided_slice %0 {offsets = [0, 30], sizes = [8, 1], strides = [1, 1]} : vector<8x32xf32> to vector<8x1xf32>
    %c0_29 = arith.constant 0 : index
    %c27 = arith.constant 27 : index
    %56 = vector.load %arg2[%c0_29, %c27] : memref<8x32xf32, #tpu.memory_space<vmem>>, vector<8x1xf32>
    tpu.vector_store %arg2[%c0_29, %c27], %55 {strides = array<i32>} : memref<8x32xf32, #tpu.memory_space<vmem>>, vector<8x1xf32>,
    %57 = vector.extract_strided_slice %0 {offsets = [0, 7], sizes = [8, 1], strides = [1, 1]} : vector<8x32xf32> to vector<8x1xf32>
    %c0_30 = arith.constant 0 : index
    %c28 = arith.constant 28 : index
    %58 = vector.load %arg2[%c0_30, %c28] : memref<8x32xf32, #tpu.memory_space<vmem>>, vector<8x1xf32>
    tpu.vector_store %arg2[%c0_30, %c28], %57 {strides = array<i32>} : memref<8x32xf32, #tpu.memory_space<vmem>>, vector<8x1xf32>,
    %59 = vector.extract_strided_slice %0 {offsets = [0, 15], sizes = [8, 1], strides = [1, 1]} : vector<8x32xf32> to vector<8x1xf32>
    %c0_31 = arith.constant 0 : index
    %c29 = arith.constant 29 : index
    %60 = vector.load %arg2[%c0_31, %c29] : memref<8x32xf32, #tpu.memory_space<vmem>>, vector<8x1xf32>
    tpu.vector_store %arg2[%c0_31, %c29], %59 {strides = array<i32>} : memref<8x32xf32, #tpu.memory_space<vmem>>, vector<8x1xf32>,
    %61 = vector.extract_strided_slice %0 {offsets = [0, 23], sizes = [8, 1], strides = [1, 1]} : vector<8x32xf32> to vector<8x1xf32>
    %c0_32 = arith.constant 0 : index
    %c30 = arith.constant 30 : index
    %62 = vector.load %arg2[%c0_32, %c30] : memref<8x32xf32, #tpu.memory_space<vmem>>, vector<8x1xf32>
    tpu.vector_store %arg2[%c0_32, %c30], %61 {strides = array<i32>} : memref<8x32xf32, #tpu.memory_space<vmem>>, vector<8x1xf32>,
    %63 = vector.extract_strided_slice %0 {offsets = [0, 0], sizes = [8, 1], strides = [1, 1]} : vector<8x32xf32> to vector<8x1xf32>
    %c0_33 = arith.constant 0 : index
    %c31 = arith.constant 31 : index
    %64 = vector.load %arg2[%c0_33, %c31] : memref<8x32xf32, #tpu.memory_space<vmem>>, vector<8x1xf32>
    tpu.vector_store %arg2[%c0_33, %c31], %63 {strides = array<i32>} : memref<8x32xf32, #tpu.memory_space<vmem>>, vector<8x1xf32>,
    return
  }
  func.func @transform_0(%arg0: i32) -> (i32, i32) {
    %c0_i32 = arith.constant 0 : i32
    %c0_i32_0 = arith.constant 0 : i32
    return %arg0, %c0_i32 : i32, i32
  }
  func.func @transform_1(%arg0: i32) -> (i32, i32) {
    %c0_i32 = arith.constant 0 : i32
    %c0_i32_0 = arith.constant 0 : i32
    return %arg0, %c0_i32 : i32, i32
  }
}

</mosaic_0001>

<bundles_post_ra>
// kernel: tpu_custom_call.1
= control target key start
LH: loop header
LB: loop body
LE: loop exit
PB: predicated region body
PF: predicated region fallthrough
CT: control target
= control target key end

     0   :  { %6 = vsyncpa [#allocation3], 0  ;;  %s826_s0 = inlined_call_operand.hbm [shape: f32[16,32], index: 0, kind: input, shape index: {}]   ;;  %s827_s1 = inlined_call_operand.hbm [shape: f32[16,32], index: 1, kind: output, shape index: {}]  }
   0x1   :  { %8 = vsyncpa [#allocation3 + $0x1], 0 }
   0x2   :  { %9 = vsyncpa [#allocation4], 0 }
   0x3   :  { %11 = vsyncpa [#allocation4 + $0x1], 0  ;;  %s606_s6 = smov 0   ;;  %s608_s7 = smov 0  }
   0x4   :  { %s610_s8 = smov 0   ;;  %s612_s9 = smov 0  }
   0x5 LB: > { %s627_s10 = sadd.s32 4294967295, %s560_s9   ;;  %s378_s11 = sadd.s32 4294967294, %s560_s9   ;;  %s560_s9 = sphi %s612_s9, %s844_s9   ;;  %s556_s8 = sphi %s610_s8, %s843_s8   ;;  %s552_s7 = sphi %s608_s7, %s842_s7   ;;  %s548_s6 = sphi %s606_s6, %s841_s6  }
   0x6   : > { %s631_s12 = sadd.s32 1, %s560_s9   ;;  %s24_s13 = sadd.s32 1, %s556_s8 }
   0x7   : > { %s21_s14 = ssub.s32 %s560_s9, %s631_s12  ;;  %p31_p0 = scmp.ne.s32.totalorder %s556_s8, %s552_s7 }
   0x8   : > { %p22_p1 = scmp.eq.s32.totalorder %s21_s14, 0  ;;  %p32_p2 = scmp.eq.s32.totalorder %s560_s9, 0 }
   0x9   : > { %p37_p3 = scmp.ne.s32.totalorder %s552_s7, %s548_s6  ;;  %p38_p4 = scmp.eq.s32.totalorder %s627_s10, 0 }
   0xa   : > { %s643_s15 = scalar_select %p22_p1, %s556_s8, %s24_s13  }
   0xb   : > { %p645_p5 = por %p32_p2, %p31_p0  ;;  %p649_p6 = por %p38_p4, %p37_p3 }
   0xc   : > { %p61_p7 = scmp.eq.s32.totalorder %s627_s10, 1  ;;  %p67_p8 = scmp.eq.s32.totalorder %s378_s11, 1 }
   0xd   : > { %s831_s17 = scalar_select %p649_p6, 1, 0 }
   0xe   : > { %p402_p10 = scmp.lt.s32.totalorder %s560_s9, 2  ;;  %p656_p11 = por %p61_p7, %p31_p0 }
   0xf   : > { %p660_p12 = por %p67_p8, %p37_p3  ;;  %s87_s20 = sand.u32 1, %s556_s8  }
  0x10   : > { %s832_s18 = scalar_select %p656_p11, 1, 0 }
  0x11   : > { %s833_s19 = scalar_select %p660_p12, 1, 0 }
  0x12   : > { %s382_s21 = sshll.u32 %s560_s9, 7  ;;  %s381_s22 = sshll.u32 %s87_s20, 3 }
  0x13   : > { %s669_s25 = scalar_lea.hbm %s826_s0, %s382_s21  ;;  %s91_s26 = scalar_lea.vmem [#allocation2], %s381_s22 }
  0x14   : > { %s98_s27 = sshll.u32 %s91_s26, 4  ;;  %p673_p13 = pnand %p402_p10, %p645_p5  ;;  %s677_s27 = int_to_ptr.vmem [resolvable:$true] %s98_s27 }
  0x15   : > { %s88_s29 = scalar_lea.sflag [#allocation3], %s87_s20  ;;  %s468_s30 = scalar_lea.hbm %s669_s25, 128 }
  0x16   : > { %p469_p2 = scmp.ne.s32.totalorder %s669_s25, %s468_s30  ;;  %p470_p3 = pneg %p673_p13 }
  0x17   : > { %s473_s4 = scalar_lea.hbm %s826_s0, 256  ;;  %p474_p5 = scmp.lt.s32.totalorder %s669_s25, %s826_s0 }
  0x18   : > { %p471_p4 = pnand %p470_p3, %p469_p2  ;;  %p475_p8 = scmp.lt.s32.totalorder %s473_s4, %s468_s30 }
  0x1a   : > { %p472_p7 = pneg %p471_p4  ;;  %p476_p10 = por %p475_p8, %p474_p5 }
  0x1c   : > { %p477_p9 = pnand %p476_p10, %p472_p7 }
  0x1e   : > { %480 = shalt.err (!%p477_p9)
}
  0x1f   : > { %s481_s13 = scalar_lea.vmem %s677_s27, 128  ;;  %s562_s14 = smov [#allocation2]  }
  0x20   : > { %p482_p0 = scmp.ne.s32.totalorder %s677_s27, %s481_s13  ;;  %s486_s16 = sshll.u32 %s562_s14, 4  ;;  %s487_s16 = int_to_ptr.vmem [resolvable:$false] %s486_s16 }
  0x21   : > { %s488_s20 = scalar_lea.vmem %s487_s16, 256  ;;  %p489_p4 = scmp.lt.s32.totalorder %s677_s27, %s487_s16 }
  0x22   : > { %p484_p1 = pnand %p482_p0, %p470_p3  ;;  %p490_p12 = scmp.lt.s32.totalorder %s488_s20, %s481_s13 }
  0x24   : > { %p485_p2 = pneg %p484_p1  ;;  %p491_p11 = por %p490_p12, %p489_p4 }
  0x26   : > { %p492_p6 = pnand %p491_p11, %p485_p2 }
  0x28   : > { %495 = shalt.err (!%p492_p6)
}
  0x29   : > { %397 = dma.hbm_to_vmem [thread:$0]  (!%p673_p13), %s669_s25, 128, %s677_s27, %s88_s29  }
  0x2a   : > { %p835_p9 = scmp.lt.s32.totalorder %s560_s9, 3  ;;  %p836_p7 = scmp.ge.s32.totalorder %s560_s9, 1 }
  0x2c   : > { %p104_p0 = pnand %p836_p7, %p835_p9 }
  0x2d   : > { %s704_s21 = sand.u32 (!%p104_p0), 1, %s552_s7   ;;  %p837_p6 = scmp.ne.s32.totalorder (!%p104_p0), %s831_s17, 0 }
  0x2e   : > { %107 = sbr.rel (%p104_p0) target bundleno = 242 (0xf2), region = 24  ;;  %s384_s22 = sshll.u32 (!%p104_p0), %s704_s21, 3 }
  0x2f   : > { %s110_s23 = scalar_lea.sflag (!%p104_p0), [#allocation3], %s704_s21  ;;  %s113_s24 = scalar_lea.vmem (!%p104_p0), [#allocation2], %s384_s22 }
  0x33   : > { %539 = dma.done.wait (%p837_p6), %s110_s23, 128  }
  0x34   : > { %541 = vsyncadd (%p837_p6), %s110_s23, 4294967168  ;;  %v714_v0 = vld [vmem:[%s113_s24] sm:$0xff]  ;;  %s563_s25 = smov 97   ;;  %s564_s26 = smov 114   ;;  %vm137_vm0 = vcmask 7168   ;;  %vm142_vm1 = vcmask 15368  }
  0x35   : > { %134 = vrot.lane.b32.xlu0 %v714_v0, %s563_s25  ;;  %144 = vrot.lane.b32.xlu1 %v714_v0, %s564_s26  ;;  %s565_s27 = smov 121   ;;  %s566_s28 = smov 107   ;;  %vm147_vm2 = vcmask 23568   ;;  %vm152_vm3 = vcmask 31768   ;;  %vm157_vm4 = vcmask 39968   ;;  %vm162_vm5 = vcmask 48168  }
  0x36   : > { %s567_s29 = smov 3   ;;  %s568_s30 = smov 124   ;;  %vm167_vm6 = vcmask 56368   ;;  %vm172_vm7 = vcmask 64568   ;;  %vm177_vm8 = vcmask 72768   ;;  %vm182_vm9 = vcmask 80968  }
  0x37   : > { %s569_s17 = smov 117   ;;  %s570_s2 = smov 110   ;;  %vm187_vm10 = vcmask 89168   ;;  %vm192_vm11 = vcmask 97368   ;;  %vm197_vm12 = vcmask 105568   ;;  %vm202_vm13 = vcmask 113768  }
  0x38   : > { %s571_s3 = smov 6   ;;  %s572_s4 = smov 127   ;;  %vm207_vm14 = vcmask 121968   ;;  %vm212_vm15 = vcmask 130168  }
  0x39   : > { %139 = vrot.lane.b32.xlu0 %v714_v0, %s565_s27  ;;  %149 = vrot.lane.b32.xlu1 %v714_v0, %s566_s28  ;;  %s573_s5 = smov 120   ;;  %s574_s11 = smov 113  }
  0x3a   : > { %s575_s13 = smov 9   ;;  %s576_s14 = smov 2  }
  0x3b   : > { %s577_s16 = smov 123   ;;  %s578_s20 = smov 116  }
  0x3c   : > { %s579_s23 = smov 12   ;;  %s580_s24 = smov 5  }
  0x3d   : > { %154 = vrot.lane.b32.xlu0 %v714_v0, %s567_s29  ;;  %159 = vrot.lane.b32.xlu1 %v714_v0, %s568_s30  ;;  %s581_s25 = smov 126   ;;  %s582_s26 = smov 119  }
  0x3e   : > { %s583_s27 = smov 15   ;;  %s584_s28 = smov 8  }
  0x3f   : > { %s585_s29 = smov 1   ;;  %s586_s30 = smov 122  }
  0x40   : > { %p838_p12 = scmp.ne.s32.totalorder %s832_s18, 0 }
  0x41   : > { %164 = vrot.lane.b32.xlu0 %v714_v0, %s569_s17  ;;  %169 = vrot.lane.b32.xlu1 %v714_v0, %s570_s2  ;;  %s587_s17 = smov 18   ;;  %s588_s2 = smov 11  }
  0x45   : > { %174 = vrot.lane.b32.xlu0 %v714_v0, %s571_s3  ;;  %179 = vrot.lane.b32.xlu1 %v714_v0, %s572_s4  ;;  %s589_s3 = smov 4   ;;  %s590_s4 = smov 125  }
  0x49   : > { %184 = vrot.lane.b32.xlu0 %v714_v0, %s573_s5  ;;  %189 = vrot.lane.b32.xlu1 %v714_v0, %s574_s11  ;;  %s591_s5 = smov 21   ;;  %s592_s11 = smov 14  }
  0x4d   : > { %194 = vrot.lane.b32.xlu0 %v714_v0, %s575_s13  ;;  %199 = vrot.lane.b32.xlu1 %v714_v0, %s576_s14  ;;  %s593_s13 = smov 7   ;;  %s594_s14 = smov 31  }
  0x51   : > { %204 = vrot.lane.b32.xlu0 %v714_v0, %s577_s16  ;;  %209 = vrot.lane.b32.xlu1 %v714_v0, %s578_s20  ;;  %s750_s16 = scalar_lea.vmem [#allocation5], %s384_s22  ;;  %s387_s22 = sshll.u32 %s627_s10, 7 }
  0x52   : > { %s308_s20 = sshll.u32 %s750_s16, 4  ;;  %s595_s10 = smov [#allocation5]   ;;  %s309_s20 = int_to_ptr.vmem [resolvable:$true] %s308_s20 }
  0x55   : > { %214 = vrot.lane.b32.xlu0 %v714_v0, %s579_s23  ;;  %219 = vrot.lane.b32.xlu1 %v714_v0, %s580_s24 }
  0x59   : > { %224 = vrot.lane.b32.xlu0 %v714_v0, %s581_s25  ;;  %229 = vrot.lane.b32.xlu1 %v714_v0, %s582_s26  ;;  %s787_s25 = scalar_lea.hbm %s827_s1, %s387_s22  ;;  %s295_s26 = scalar_lea.sflag [#allocation4], %s704_s21 }
  0x5d   : > { %234 = vrot.lane.b32.xlu0 %v714_v0, %s583_s27  ;;  %239 = vrot.lane.b32.xlu1 %v714_v0, %s584_s28  ;;  %s496_s27 = scalar_lea.vmem %s309_s20, 128  ;;  %s500_s28 = sshll.u32 %s595_s10, 4  ;;  %s501_s28 = int_to_ptr.vmem [resolvable:$false] %s500_s28 }
  0x5e   : > { %p497_p11 = scmp.ne.s32.totalorder %s309_s20, %s496_s27  ;;  %p503_p3 = scmp.lt.s32.totalorder %s309_s20, %s501_s28 }
  0x60   : > { %p498_p13 = pnand %p497_p11, %p838_p12 }
  0x61   : > { %244 = vrot.lane.b32.xlu0 %v714_v0, %s585_s29  ;;  %249 = vrot.lane.b32.xlu1 %v714_v0, %s586_s30  ;;  %s502_s29 = scalar_lea.vmem %s501_s28, 256 }
  0x62   : > { %p499_p1 = pneg %p498_p13  ;;  %p504_p5 = scmp.lt.s32.totalorder %s502_s29, %s496_s27 }
  0x64   : > { %p505_p8 = por %p504_p5, %p503_p3 }
  0x65   : > { %254 = vrot.lane.b32.xlu0 %v714_v0, %s587_s17  ;;  %259 = vrot.lane.b32.xlu1 %v714_v0, %s588_s2 }
  0x66   : > { %p506_p10 = pnand %p505_p8, %p499_p1 }
  0x69   : > { %264 = vrot.lane.b32.xlu0 %v714_v0, %s589_s3  ;;  %269 = vrot.lane.b32.xlu1 %v714_v0, %s590_s4 }
  0x6d   : > { %274 = vrot.lane.b32.xlu0 %v714_v0, %s591_s5  ;;  %279 = vrot.lane.b32.xlu1 %v714_v0, %s592_s11 }
  0x71   : > { %284 = vrot.lane.b32.xlu0 %v714_v0, %s593_s13  ;;  %289 = vrot.lane.b32.xlu1 %v714_v0, %s594_s14 }
  0xa7   : > { %v135_v1 = vpop.permute.xlu0 %134  ;;  %v145_v2 = vpop.permute.xlu1 %144 }
  0xa8   : > { %138 = vst.msk [vmem:[%s750_s16] sm:$0xff] %vm137_vm0, %v135_v1  ;;  %vm217_vm0 = vcmask 138368  }
  0xab   : > { %v140_v3 = vpop.permute.xlu0 %139  ;;  %v150_v4 = vpop.permute.xlu1 %149 }
  0xac   : > { %143 = vst.msk [vmem:[%s750_s16] sm:$0xff] %vm142_vm1, %v140_v3  ;;  %vm222_vm1 = vcmask 146568  }
  0xad   : > { %148 = vst.msk [vmem:[%s750_s16] sm:$0xff] %vm147_vm2, %v145_v2  ;;  %vm227_vm2 = vcmask 154768  }
  0xae   : > { %153 = vst.msk [vmem:[%s750_s16] sm:$0xff] %vm152_vm3, %v150_v4  ;;  %vm232_vm3 = vcmask 162968  }
  0xaf   : > { %v155_v5 = vpop.permute.xlu0 %154  ;;  %v160_v6 = vpop.permute.xlu1 %159 }
  0xb0   : > { %158 = vst.msk [vmem:[%s750_s16] sm:$0xff] %vm157_vm4, %v155_v5  ;;  %vm237_vm4 = vcmask 171168  }
  0xb1   : > { %163 = vst.msk [vmem:[%s750_s16] sm:$0xff] %vm162_vm5, %v160_v6  ;;  %vm242_vm5 = vcmask 179368  }
  0xb3   : > { %v165_v7 = vpop.permute.xlu0 %164  ;;  %v170_v8 = vpop.permute.xlu1 %169 }
  0xb4   : > { %168 = vst.msk [vmem:[%s750_s16] sm:$0xff] %vm167_vm6, %v165_v7  ;;  %vm247_vm6 = vcmask 187568  }
  0xb5   : > { %173 = vst.msk [vmem:[%s750_s16] sm:$0xff] %vm172_vm7, %v170_v8  ;;  %vm252_vm7 = vcmask 195768  }
  0xb7   : > { %v175_v9 = vpop.permute.xlu0 %174  ;;  %v180_v10 = vpop.permute.xlu1 %179 }
  0xb8   : > { %178 = vst.msk [vmem:[%s750_s16] sm:$0xff] %vm177_vm8, %v175_v9  ;;  %vm257_vm8 = vcmask 203968  }
  0xb9   : > { %183 = vst.msk [vmem:[%s750_s16] sm:$0xff] %vm182_vm9, %v180_v10  ;;  %vm262_vm9 = vcmask 212168  }
  0xbb   : > { %v185_v11 = vpop.permute.xlu0 %184  ;;  %v190_v12 = vpop.permute.xlu1 %189 }
  0xbc   : > { %188 = vst.msk [vmem:[%s750_s16] sm:$0xff] %vm187_vm10, %v185_v11  ;;  %vm267_vm10 = vcmask 220368  }
  0xbd   : > { %193 = vst.msk [vmem:[%s750_s16] sm:$0xff] %vm192_vm11, %v190_v12  ;;  %vm272_vm11 = vcmask 228568  }
  0xbf   : > { %v195_v13 = vpop.permute.xlu0 %194  ;;  %v200_v14 = vpop.permute.xlu1 %199 }
  0xc0   : > { %198 = vst.msk [vmem:[%s750_s16] sm:$0xff] %vm197_vm12, %v195_v13  ;;  %vm277_vm12 = vcmask 236768  }
  0xc1   : > { %203 = vst.msk [vmem:[%s750_s16] sm:$0xff] %vm202_vm13, %v200_v14  ;;  %vm282_vm13 = vcmask 244968  }
  0xc3   : > { %v205_v15 = vpop.permute.xlu0 %204  ;;  %v210_v16 = vpop.permute.xlu1 %209 }
  0xc4   : > { %208 = vst.msk [vmem:[%s750_s16] sm:$0xff] %vm207_vm14, %v205_v15  ;;  %vm287_vm14 = vcmask 253168  }
  0xc5   : > { %213 = vst.msk [vmem:[%s750_s16] sm:$0xff] %vm212_vm15, %v210_v16  ;;  %vm292_vm15 = vcmask 261368  }
  0xc7   : > { %v215_v17 = vpop.permute.xlu0 %214  ;;  %v220_v18 = vpop.permute.xlu1 %219 }
  0xc8   : > { %218 = vst.msk [vmem:[%s750_s16] sm:$0xff] %vm217_vm0, %v215_v17 }
  0xc9   : > { %223 = vst.msk [vmem:[%s750_s16] sm:$0xff] %vm222_vm1, %v220_v18 }
  0xcb   : > { %v225_v19 = vpop.permute.xlu0 %224  ;;  %v230_v20 = vpop.permute.xlu1 %229 }
  0xcc   : > { %228 = vst.msk [vmem:[%s750_s16] sm:$0xff] %vm227_vm2, %v225_v19 }
  0xcd   : > { %233 = vst.msk [vmem:[%s750_s16] sm:$0xff] %vm232_vm3, %v230_v20 }
  0xcf   : > { %v235_v21 = vpop.permute.xlu0 %234  ;;  %v240_v22 = vpop.permute.xlu1 %239 }
  0xd0   : > { %238 = vst.msk [vmem:[%s750_s16] sm:$0xff] %vm237_vm4, %v235_v21 }
  0xd1   : > { %243 = vst.msk [vmem:[%s750_s16] sm:$0xff] %vm242_vm5, %v240_v22 }
  0xd3   : > { %v245_v23 = vpop.permute.xlu0 %244  ;;  %v250_v24 = vpop.permute.xlu1 %249 }
  0xd4   : > { %248 = vst.msk [vmem:[%s750_s16] sm:$0xff] %vm247_vm6, %v245_v23 }
  0xd5   : > { %253 = vst.msk [vmem:[%s750_s16] sm:$0xff] %vm252_vm7, %v250_v24 }
  0xd7   : > { %v255_v25 = vpop.permute.xlu0 %254  ;;  %v260_v26 = vpop.permute.xlu1 %259 }
  0xd8   : > { %258 = vst.msk [vmem:[%s750_s16] sm:$0xff] %vm257_vm8, %v255_v25 }
  0xd9   : > { %263 = vst.msk [vmem:[%s750_s16] sm:$0xff] %vm262_vm9, %v260_v26 }
  0xdb   : > { %v265_v27 = vpop.permute.xlu0 %264  ;;  %v270_v28 = vpop.permute.xlu1 %269 }
  0xdc   : > { %268 = vst.msk [vmem:[%s750_s16] sm:$0xff] %vm267_vm10, %v265_v27 }
  0xdd   : > { %273 = vst.msk [vmem:[%s750_s16] sm:$0xff] %vm272_vm11, %v270_v28 }
  0xdf   : > { %v275_v29 = vpop.permute.xlu0 %274  ;;  %v280_v30 = vpop.permute.xlu1 %279 }
  0xe0   : > { %278 = vst.msk [vmem:[%s750_s16] sm:$0xff] %vm277_vm12, %v275_v29 }
  0xe1   : > { %283 = vst.msk [vmem:[%s750_s16] sm:$0xff] %vm282_vm13, %v280_v30 }
  0xe3   : > { %v285_v31 = vpop.permute.xlu0 %284  ;;  %v290_v32 = vpop.permute.xlu1 %289 }
  0xe4   : > { %288 = vst.msk [vmem:[%s750_s16] sm:$0xff] %vm287_vm14, %v285_v31 }
  0xe5   : > { %293 = vst.msk [vmem:[%s750_s16] sm:$0xff] %vm292_vm15, %v290_v32 }
  0xe6   : > { %509 = shalt.err (!%p506_p10)
}
  0xe7   : > { %s510_s30 = scalar_lea.hbm %s787_s25, 128  ;;  %s514_s2 = scalar_lea.hbm %s827_s1, 256 }
  0xe8   : > { %p511_p2 = scmp.ne.s32.totalorder %s787_s25, %s510_s30  ;;  %p515_p7 = scmp.lt.s32.totalorder %s787_s25, %s827_s1 }
  0xe9   : > { %p516_p0 = scmp.lt.s32.totalorder %s514_s2, %s510_s30 }
  0xea   : > { %p512_p4 = pnand %p511_p2, %p838_p12 }
  0xeb   : > { %p517_p6 = por %p516_p0, %p515_p7 }
  0xec   : > { %p513_p9 = pneg %p512_p4 }
  0xee   : > { %p518_p11 = pnand %p517_p6, %p513_p9 }
  0xf0   : > { %521 = shalt.err (!%p518_p11)
}
  0xf1   : > { %392 = dma.vmem_to_hbm [thread:$0]  (%p838_p12), %s309_s20, 128, %s787_s25, %s295_s26  }
  0xf2 PF: > { %s320_s5 = sand.u32 1, %s548_s6   ;;  %p839_p13 = scmp.ne.s32.totalorder %s833_s19, 0 }
  0xf3   : > { %p840_p1 = scmp.ge.s32.totalorder %s560_s9, 2  ;;  %s321_s11 = scalar_lea.sflag [#allocation4], %s320_s5 }
  0xf5   : > { %p399_p3 = pnand %p840_p1, %p839_p13 }
  0xf7   : > { %p400_p5 = pneg %p399_p3 }
  0xf9   : > { %543 = dma.done.wait (%p400_p5), %s321_s11, 128  }
  0xfa   : > { %545 = vsyncadd (%p400_p5), %s321_s11, 4294967168  ;;  %p14_p8 = scmp.ge.s32.totalorder %s631_s12, 4   ;;  %s841_s6 = smov %s552_s7 }
  0xfb   : > { %s842_s7 = smov %s556_s8  ;;  %s843_s8 = smov %s643_s15 }
  0xfc   : > { %s844_s9 = smov %s631_s12  ;;  %16 = sbr.rel (!%p14_p8) target bundleno = 5 (0x5), region = 69 }
 0x101   :  { %326 = vsyncpa [#allocation3], 1 }
 0x102   :  { %328 = vsyncpa [#allocation3 + $0x1], 1 }
 0x103   :  { %329 = vsyncpa [#allocation4], 1 }
 0x104   :  { %331 = vsyncpa [#allocation4 + $0x1], 1 }

</bundles_post_ra>
